<compile_context>
chip_gen: v7x
topology: tpu7x:2x2x1
jax: 0.10.0
libtpu: 0.0.40
codegen_flags: <defaults>
</compile_context>

<pallas_src>
import numpy as np
import jax
import jax.numpy as jnp
from jax.experimental import pallas as pl
from jax.experimental.pallas import tpu as pltpu


def _round_up(n: int, m: int) -> int:
    return -(-n // m) * m


def _pick_batch_tile(batch: int, d_pad: int, nz_pad: int, cap: int = 1024) -> int:
    """Batch tile: multiple of 8, VMEM-aware, and >= 2 grid steps when possible."""
    # Conservative VMEM budget so double-buffered (z, traj) tiles fit under the
    # default scoped-VMEM limit on every generation (v5e default is ~16 MiB).
    budget = 12 * 1024 * 1024
    bytes_per_row = 2 * 4 * (d_pad + nz_pad)          # double-buffered f32 rows
    bt_vmem = max(8, budget // max(bytes_per_row, 1))
    bt = min(cap, batch, bt_vmem)
    if batch >= 16:
        # Keep the grid at >= 2 steps so dimension_semantics=("parallel",) can
        # shard the grid across both TensorCores on v7x (never worse elsewhere).
        bt = min(bt, _round_up(batch, 2) // 2)
    bt = max(8, (bt // 8) * 8)
    return bt


# --------------------------------------------------------------------------
# Pallas kernel: one MXU push, one unmasked lane-dense store.
# --------------------------------------------------------------------------
def _diff_mpc_affine_kernel(z_ref, T_ref, traj_ref):
    # z:    (bt, nz_pad)      batch on sublanes, [x0 | u0 | 0-pad] on lanes
    # T:    (nz_pad, D_pad)   affine map; lanes [x_0..x_N | u_0..u_{N-1} | H | 0]
    # traj: (bt, D_pad)       lane-dense, multiple of 128 -> unmasked vst
    traj_ref[...] = jnp.dot(
        z_ref[...], T_ref[...], preferred_element_type=jnp.float32
    ).astype(traj_ref.dtype)


# --------------------------------------------------------------------------
# Wrapper ("module")
# --------------------------------------------------------------------------
class AcadosDiffMpcPallas:
    """Pallas re-implementation of AcadosDiffMpc.forward for a synthetic LQR OCP."""

    def __init__(self, A, B, Q, R, Qf, n_horizon, batch_tile_cap=1024):
        # Host-side setup math in float64 for accuracy of the monolithic maps.
        A64 = np.asarray(A, dtype=np.float64)
        B64 = np.asarray(B, dtype=np.float64)
        Q64 = np.asarray(Q, dtype=np.float64)
        R64 = np.asarray(R, dtype=np.float64)
        Qf64 = np.asarray(Qf, dtype=np.float64)

        self.N = int(n_horizon)
        self.nx = int(A64.shape[0])
        self.nu = int(B64.shape[1])
        self.bt_cap = int(batch_tile_cap)

        # "Solver setup" (done once): Riccati gains + stacked affine maps.
        K64 = self._riccati_gains(A64, B64, Q64, R64, Qf64)     # (N, nu, nx)
        self.K = jnp.asarray(K64, jnp.float32)

        self.nz_pad = _round_up(self.nx + self.nu, 8)
        self.D = (self.N + 1) * self.nx + self.N * self.nu      # flat traj width
        # Reserve nz_pad extra lanes for the folded-in value Hessian columns.
        self.D_pad = max(128, _round_up(self.D + self.nz_pad, 128))

        self.T_free = self._build_affine_map(A64, B64, Q64, R64, Qf64, K64, False)
        self.T_fixed = self._build_affine_map(A64, B64, Q64, R64, Qf64, K64, True)

    # -------------------- setup-time math (numpy float64) ------------------
    def _riccati_gains(self, A, B, Q, R, Qf):
        P = Qf
        gains = []
        for _ in range(self.N):
            BtP = B.T @ P
            K = np.linalg.solve(R + BtP @ B, BtP @ A)
            P = Q + A.T @ P @ A - A.T @ P @ B @ K
            gains.append(K)
        return np.stack(gains[::-1])                             # order k = 0..N-1

    def _build_affine_map(self, A, B, Q, R, Qf, K, use_u0):
        """T (nz_pad, D_pad): lanes = [x_0..x_N | u_0..u_{N-1} | H cols | 0-pad].

        With z = [x0 | u0 | 0-pad] (row vector), x_k = z @ Sx_k.T and
        u_k = z @ Su_k.T; the OCP value is 0.5 * z H z' with H symmetric.
        """
        nx, nu, N, nz_pad = self.nx, self.nu, self.N, self.nz_pad

        Sx = np.zeros((nx, nz_pad))
        Sx[:, :nx] = np.eye(nx)
        Sx_list, Su_list = [Sx], []
        for k in range(N):
            if use_u0 and k == 0:
                Su = np.zeros((nu, nz_pad))
                Su[:, nx:nx + nu] = np.eye(nu)
            else:
                Su = -K[k] @ Sx
            Su_list.append(Su)
            Sx = A @ Sx + B @ Su
            Sx_list.append(Sx)

        # Value Hessian (cost = 0.5 z H z').
        H = sum(Sx_list[k].T @ Q @ Sx_list[k] for k in range(N))
        H = H + sum(Su_list[k].T @ R @ Su_list[k] for k in range(N))
        H = H + Sx_list[N].T @ Qf @ Sx_list[N]                   # (nz_pad, nz_pad)

        # Flat layout: [x_0 .. x_N | u_0 .. u_{N-1} | H | zeros].
        blocks = [S.T for S in Sx_list] + [S.T for S in Su_list] + [H]
        T = np.concatenate(blocks, axis=1)                       # (nz_pad, D + nz_pad)
        T_pad = np.zeros((nz_pad, self.D_pad))
        T_pad[:, :T.shape[1]] = T
        return jnp.asarray(T_pad, jnp.float32)

    # ------------------------------ forward --------------------------------
    def forward(self, x0, u0=None):
        """Returns (ctx, u0, x, u, value) — same tuple structure as the torch module."""
        x0 = x0.astype(jnp.float32)
        batch, nx = x0.shape
        nu, N = self.nu, self.N
        assert nx == self.nx

        use_u0 = u0 is not None
        T = self.T_fixed if use_u0 else self.T_free
        nz_pad, D_pad, D = self.nz_pad, self.D_pad, self.D

        # Robust batch tiling: tile is a multiple of 8; batch is padded up to a
        # multiple of the tile and the padding is sliced off afterwards.
        bt = _pick_batch_tile(batch, D_pad, nz_pad, self.bt_cap)
        batch_pad = _round_up(batch, bt)
        grid = (batch_pad // bt,)

        # Stack [x0 | u0 | 0-pad] on the lane axis (tiny setup op).
        z = jnp.zeros((batch_pad, nz_pad), jnp.float32).at[:batch, :nx].set(x0)
        if use_u0:
            z = z.at[:batch, nx:nx + nu].set(u0.astype(jnp.float32))

        cost = pl.CostEstimate(
            flops=2 * batch_pad * nz_pad * D_pad,
            transcendentals=0,
            bytes_accessed=4 * (batch_pad * nz_pad + nz_pad * D_pad
                                + batch_pad * D_pad),
        )

        # TODO(synk): traj could be emitted in bfloat16 (cast on store) for a
        # ~2x writeback saving if downstream consumers tolerate it.
        traj = pl.pallas_call(
            _diff_mpc_affine_kernel,
            out_shape=jax.ShapeDtypeStruct((batch_pad, D_pad), jnp.float32),
            grid_spec=pltpu.PrefetchScalarGridSpec(
                num_scalar_prefetch=0,
                grid=grid,
                in_specs=[
                    pl.BlockSpec((bt, nz_pad), lambda i: (i, 0)),       # z
                    pl.BlockSpec((nz_pad, D_pad), lambda i: (0, 0)),    # T
                ],
                out_specs=pl.BlockSpec((bt, D_pad), lambda i: (i, 0)),  # traj
            ),
            compiler_params=pltpu.CompilerParams(
                dimension_semantics=("parallel",)),
            cost_estimate=cost,
        )(z, T)

        n_xflat = (N + 1) * nx
        x = traj[:batch, :n_xflat].reshape(batch, N + 1, nx)
        u = traj[:batch, n_xflat:n_xflat + N * nu].reshape(batch, N, nu)
        # Value from the folded-in Hessian lanes: q = z @ H, value = 0.5 z' H z.
        q = traj[:batch, D:D + nz_pad]
        value = 0.5 * jnp.sum(q * z[:batch], axis=-1)
        u0_out = u0.astype(jnp.float32) if use_u0 else u[:, 0, :]

        # TODO(synk): the real ctx holds acados solver internals (SQP iterates,
        # sensitivity OCP state, warmstart buffers) with no Pallas equivalent;
        # expose a lightweight dict instead.
        ctx = {
            "status": 0,
            "gains": self.K,
            "traj_map": T,
            "warmstart_x": x,
            "warmstart_u": u,
        }
        return ctx, u0_out, x, u, value


# --------------------------------------------------------------------------
# Pure-JAX reference (sanity check of the kernel)
# --------------------------------------------------------------------------
def _reference_rollout(x0, u0, A, B, Q, R, Qf, K, use_u0):
    batch = x0.shape[0]
    N = K.shape[0]
    xs = [x0]
    us = []
    cost = jnp.zeros((batch,), jnp.float32)
    x_k = x0
    for k in range(N):
        u_k = -(x_k @ K[k].T)
        if use_u0 and k == 0:
            u_k = u0
        us.append(u_k)
        cost += 0.5 * jnp.sum((x_k @ Q) * x_k, axis=-1)
        cost += 0.5 * jnp.sum((u_k @ R) * u_k, axis=-1)
        x_k = x_k @ A.T + u_k @ B.T
        xs.append(x_k)
    cost += 0.5 * jnp.sum((x_k @ Qf) * x_k, axis=-1)
    return jnp.stack(xs, axis=1), jnp.stack(us, axis=1), cost


if __name__ == "__main__":
    nx, nu, N, batch = 4, 2, 8, 16

    key = jax.random.PRNGKey(0)
    kA, kB, kx0, ku0 = jax.random.split(key, 4)

    A = jnp.eye(nx, dtype=jnp.float32) + 0.05 * jax.random.normal(kA, (nx, nx), jnp.float32)
    B = 0.1 * jax.random.normal(kB, (nx, nu), jnp.float32)
    Q = jnp.eye(nx, dtype=jnp.float32)
    R = 0.1 * jnp.eye(nu, dtype=jnp.float32)
    Qf = jnp.eye(nx, dtype=jnp.float32)

    x0 = jax.random.normal(kx0, (batch, nx), jnp.float32)
    u0 = 0.1 * jax.random.normal(ku0, (batch, nu), jnp.float32)

    mpc = AcadosDiffMpcPallas(A, B, Q, R, Qf, n_horizon=N)

    # Case 1: u0 is None (free initial control).
    ctx, u0_out, x, u, value = mpc.forward(x0)
    jax.block_until_ready((u0_out, x, u, value))

    # Case 2: u0 fixed.
    ctx2, u0_out2, x2, u2, value2 = mpc.forward(x0, u0=u0)
    jax.block_until_ready((u0_out2, x2, u2, value2))

    # Sanity check against pure-JAX reference.
    x_ref, u_ref, v_ref = _reference_rollout(x0, u0, A, B, Q, R, Qf, mpc.K, False)
    x_ref2, u_ref2, v_ref2 = _reference_rollout(x0, u0, A, B, Q, R, Qf, mpc.K, True)
    assert jnp.allclose(x, x_ref, atol=1e-3, rtol=1e-3)
    assert jnp.allclose(u, u_ref, atol=1e-3, rtol=1e-3)
    assert jnp.allclose(value, v_ref, atol=1e-3, rtol=1e-3)
    assert jnp.allclose(x2, x_ref2, atol=1e-3, rtol=1e-3)
    assert jnp.allclose(u2, u_ref2, atol=1e-3, rtol=1e-3)
    assert jnp.allclose(value2, v_ref2, atol=1e-3, rtol=1e-3)
    assert u0_out.shape == (batch, nu) and value.shape == (batch,)
    assert x.shape == (batch, N + 1, nx) and u.shape == (batch, N, nu)

    print("KERNEL_OK")
</pallas_src>

<mosaic_0001>
module attributes {stable_mosaic.version = 11 : i64} {
  func.func @_diff_mpc_affine_kernel(%arg0: i32, %arg1: memref<8x8xf32, #tpu.memory_space<vmem>>, %arg2: memref<8x128xf32, #tpu.memory_space<vmem>>, %arg3: memref<8x128xf32, #tpu.memory_space<vmem>>) attributes {dimension_semantics = [#tpu.dimension_semantics<parallel>], iteration_bounds = array<i64: 2>, scalar_prefetch = 0 : i64, scratch_operands = 0 : i64, tpu.core_type = #tpu.core_type<tc>, window_params = [{transform_indices = @transform_0, window_bounds = array<i64: 8, 8>}, {pipeline_mode = #tpu.pipeline_mode<synchronous>, transform_indices = @transform_1, window_bounds = array<i64: 8, 128>}, {transform_indices = @transform_2, window_bounds = array<i64: 8, 128>}]} {
    %c0 = arith.constant 0 : index
    %c0_0 = arith.constant 0 : index
    %0 = vector.load %arg1[%c0, %c0_0] : memref<8x8xf32, #tpu.memory_space<vmem>>, vector<8x8xf32>
    %c0_1 = arith.constant 0 : index
    %c0_2 = arith.constant 0 : index
    %1 = vector.load %arg2[%c0_1, %c0_2] : memref<8x128xf32, #tpu.memory_space<vmem>>, vector<8x128xf32>
    %cst = arith.constant dense<0.000000e+00> : vector<8x128xf32>
    %2 = tpu.matmul %0, %1, %cst {dimension_numbers = #tpu.dot_dimension_numbers<[1], [0], [0], [1], [0, 0, 1, 1], [], []>} : vector<8x8xf32>, vector<8x128xf32>, vector<8x128xf32> -> vector<8x128xf32>
    %c0_3 = arith.constant 0 : index
    %c0_4 = arith.constant 0 : index
    %3 = vector.load %arg3[%c0_3, %c0_4] : memref<8x128xf32, #tpu.memory_space<vmem>>, vector<8x128xf32>
    tpu.vector_store %arg3[%c0_3, %c0_4], %2 {strides = array<i32>} : memref<8x128xf32, #tpu.memory_space<vmem>>, vector<8x128xf32>,
    return
  }
  func.func @transform_0(%arg0: i32) -> (i32, i32) {
    %c0_i32 = arith.constant 0 : i32
    %c0_i32_0 = arith.constant 0 : i32
    return %arg0, %c0_i32 : i32, i32
  }
  func.func @transform_1(%arg0: i32) -> (i32, i32) {
    %c0_i32 = arith.constant 0 : i32
    %c0_i32_0 = arith.constant 0 : i32
    %c0_i32_1 = arith.constant 0 : i32
    return %c0_i32, %c0_i32_0 : i32, i32
  }
  func.func @transform_2(%arg0: i32) -> (i32, i32) {
    %c0_i32 = arith.constant 0 : i32
    %c0_i32_0 = arith.constant 0 : i32
    return %arg0, %c0_i32 : i32, i32
  }
}

</mosaic_0001>

<bundles_post_ra>
// kernel: tpu_custom_call.1
= control target key start
LH: loop header
LB: loop body
LE: loop exit
PB: predicated region body
PF: predicated region fallthrough
CT: control target
= control target key end

     0   :  { %7 = vsyncpa [#allocation3], 0  ;;  %s533_s0 = inlined_call_operand.vmem [shape: f32[16,8], index: 0, kind: input, shape index: {}]   ;;  %s534_s1 = inlined_call_operand.vmem [shape: f32[8,128], index: 1, kind: input, shape index: {}]   ;;  %s535_s2 = inlined_call_operand.hbm [shape: f32[16,128], index: 2, kind: output, shape index: {}]  }
   0x1   :  { %9 = vsyncpa [#allocation3 + $0x1], 0  ;;  %s430_s9 = smov 0   ;;  %s432_s10 = smov 0  }
   0x2   :  { %s434_s11 = smov 0   ;;  %s436_s12 = smov 0  }
   0x3 LB: > { %s451_s13 = sadd.s32 4294967295, %s410_s12   ;;  %s289_s14 = sadd.s32 4294967294, %s410_s12   ;;  %s410_s12 = sphi %s436_s12, %s541_s12   ;;  %s406_s11 = sphi %s434_s11, %s540_s11   ;;  %s402_s10 = sphi %s432_s10, %s539_s10   ;;  %s398_s9 = sphi %s430_s9, %s538_s9  }
   0x4   : > { %s455_s15 = sadd.s32 1, %s410_s12   ;;  %s69_s16 = sadd.s32 1, %s406_s11 }
   0x5   : > { %s66_s17 = ssub.s32 %s410_s12, %s455_s15  ;;  %p79_p0 = scmp.ne.s32.totalorder %s406_s11, %s402_s10 }
   0x6   : > { %p67_p1 = scmp.eq.s32.totalorder %s66_s17, 0  ;;  %p80_p2 = scmp.eq.s32.totalorder %s451_s13, 1 }
   0x7   : > { %p85_p3 = scmp.ne.s32.totalorder %s402_s10, %s398_s9  ;;  %p86_p4 = scmp.eq.s32.totalorder %s289_s14, 1 }
   0x8   : > { %s466_s18 = scalar_select %p67_p1, %s406_s11, %s69_s16  }
   0x9   : > { %p468_p5 = por %p80_p2, %p79_p0  ;;  %p472_p6 = por %p86_p4, %p85_p3 }
   0xa   : > { %p292_p7 = scmp.ge.s32.totalorder %s410_s12, 1  ;;  %p114_p8 = scmp.lt.s32.totalorder %s410_s12, 3 }
   0xc   : > { %p115_p9 = pnand %p292_p7, %p114_p8 }
   0xd   : > { %v140_v0 = vld [vmem:[%s534_s1] sm:$0xff] (!%p115_p9)  ;;  %p135_p10 = scmp.lt.s32.totalorder (!%p115_p9), %s451_s13, 1  ;;  %v412_v1 = vmov (!%p115_p9), 0.0   ;;  %vm413_vm0 = vmmov (!%p115_p9), 0   ;;  %vm141_vm1 = vcmask (!%p115_p9), 64512   ;;  %s132_s28 = sand.u32 (!%p115_p9), 1, %s402_s10  }
   0xe   : > { %118 = sbr.rel (%p115_p9) target bundleno = 252 (0xfc), region = 28  ;;  %302 = vmatprep.subr.mxu0 (!%p115_p9), %v412_v1  ;;  %304 = vmatprep.mubr.msk.f32.mxu0 (!%p115_p9), %vm413_vm0, %v412_v1  ;;  %s293_s29 = sshll.u32 (!%p115_p9), %s132_s28, 3 }
   0xf   : > { %303 = vmatpush3.msra.mxu0 (!%p115_p9), %v140_v0  ;;  %s134_s30 = scalar_lea.vmem (!%p115_p9), [#allocation2], %s293_s29  ;;  %s297_s4 = sshll.u32 (!%p115_p9), %s451_s13, 7 }
  0x10   : > { %s230_s3 = sshll.u32 (!%p115_p9), %s134_s30, 4  ;;  %s493_s7 = scalar_lea.hbm (!%p115_p9), %s535_s2, %s297_s4  ;;  %s488_s3 = int_to_ptr.vmem [resolvable:$true] %s230_s3 }
  0x11   : > { %s217_s8 = scalar_lea.sflag (!%p115_p9), [#allocation3], %s132_s28  ;;  %s348_s14 = scalar_lea.vmem (!%p115_p9), %s488_s3, 128 }
  0x12   : > { %p349_p11 = scmp.ne.s32.totalorder (!%p115_p9), %s488_s3, %s348_s14 }
  0x14   : > { %p350_p12 = pnand (!%p115_p9), %p349_p11, %p468_p5 }
  0x15   : > { %s136_s23 = scalar_select %p135_p10, %s451_s13, 1 }
  0x16   : > { %p351_p13 = pneg %p350_p12  ;;  %s414_s13 = smov [#allocation2]  }
  0x17   : > { %s294_s24 = sshll.u32 %s136_s23, 3  ;;  %s352_s16 = sshll.u32 %s414_s13, 4  ;;  %s353_s16 = int_to_ptr.vmem [resolvable:$false] %s352_s16 }
  0x18   : > { %s138_s27 = scalar_lea.vmem %s533_s0, %s294_s24  ;;  %s354_s17 = scalar_lea.vmem %s353_s16, 256 }
  0x19   : > { %v139_v2 = vld [vmem:[%s138_s27] sm:$0xff]  ;;  %p355_p0 = scmp.lt.s32.totalorder %s488_s3, %s353_s16  ;;  %p356_p1 = scmp.lt.s32.totalorder %s354_s17, %s348_s14 }
  0x1a   : > { %305 = vmatmul.mubr.msk.f32.vlgmr.msra.gmra.mrb[0].mxu0 %vm141_vm1, %v139_v2 }
  0x1b   : > { %p357_p2 = por %p356_p1, %p355_p0 }
  0x1d   : > { %p358_p3 = pnand %p357_p2, %p351_p13 }
  0xed   : > { %v211_v3 = vpop.f32.mrb[0].mxu0 }
  0xee   : > { %215 = vst [vmem:[%s134_s30] sm:$0xff] %v211_v3  ;;  %v306_v4 = vpop.f32.mrb[1].mxu0 }
  0xef   : > { %361 = shalt.err (!%p358_p3)
}
  0xf0   : > { %s362_s21 = scalar_lea.hbm %s493_s7, 128  ;;  %s366_s24 = scalar_lea.hbm %s535_s2, 256 }
  0xf1   : > { %p363_p4 = scmp.ne.s32.totalorder %s493_s7, %s362_s21  ;;  %p367_p9 = scmp.lt.u32.totalorder %s493_s7, %s535_s2 }
  0xf2   : > { %p368_p10 = scmp.lt.u32.totalorder %s366_s24, %s362_s21  ;;  %p370_p12 = scmp.lt.u32.totalorder %s362_s21, %s493_s7 }
  0xf3   : > { %p364_p7 = pnand %p363_p4, %p468_p5 }
  0xf4   : > { %p369_p11 = por %p368_p10, %p367_p9 }
  0xf5   : > { %p365_p8 = pneg %p364_p7 }
  0xf6   : > { %p371_p13 = por %p370_p12, %p369_p11 }
  0xf8   : > { %p372_p0 = pnand %p371_p13, %p365_p8 }
  0xfa   : > { %375 = shalt.err (!%p372_p0)
}
  0xfb   : > { %307 = dma.vmem_to_hbm [thread:$0]  (%p468_p5), %s488_s3, 128, %s493_s7, %s217_s8  }
  0xfc PF: > { %p313_p1 = scmp.ge.s32.totalorder %s410_s12, 2  ;;  %s242_s27 = sand.u32 1, %s398_s9  }
  0xfd   : > { %s243_s28 = scalar_lea.sflag [#allocation3], %s242_s27 }
  0xfe   : > { %p310_p2 = pnand %p313_p1, %p472_p6 }
 0x100   : > { %393 = dma.done.wait (!%p310_p2), %s243_s28, 128  }
 0x101   : > { %395 = vsyncadd (!%p310_p2), %s243_s28, 4294967168  ;;  %p12_p3 = scmp.ge.s32.totalorder %s455_s15, 4   ;;  %s538_s9 = smov %s402_s10 }
 0x102   : > { %s539_s10 = smov %s406_s11  ;;  %s540_s11 = smov %s466_s18 }
 0x103   : > { %s541_s12 = smov %s455_s15  ;;  %14 = sbr.rel (!%p12_p3) target bundleno = 3 (0x3), region = 63 }
 0x10a   :  { %248 = vsyncpa [#allocation3], 1 }
 0x10b   :  { %250 = vsyncpa [#allocation3 + $0x1], 1 }

</bundles_post_ra>
